<compile_context>
chip_gen: v7x
topology: tpu7x:2x2x1
jax: 0.10.0
libtpu: 0.0.40
codegen_flags: <defaults>
</compile_context>

<pallas_src>
from functools import partial, lru_cache

import numpy as np
import jax
import jax.numpy as jnp
from jax import lax
from jax.experimental import pallas as pl
from jax.experimental.pallas import tpu as pltpu


def _round_up(x, mult):
    return ((x + mult - 1) // mult) * mult


# ---------------------------------------------------------------------------
# Pallas kernel: B_k batch elements per grid step.
# ---------------------------------------------------------------------------
def _harmonic_kernel(zs_ref, gcat_ref, wc_ref, bias_ref, out_ref, *,
                     b_k, c_in2, c_out_p, n_p):
    # 1) Big MXU matmul: M = b_k * 2*c_in_p rows, K = N_p, N = 2*N_p.
    #    (b_k, c_in2, n_p) -> (b_k*c_in2, n_p) is a free layout collapse
    #    because c_in2 % 8 == 0 and n_p % 128 == 0.
    zs_flat = zs_ref[...].reshape(b_k * c_in2, n_p)
    p = jnp.dot(zs_flat, gcat_ref[...], preferred_element_type=jnp.float32)
    p = p.reshape(b_k, c_in2, 2 * n_p)          # [.., :n_p]=@Gr^T  [.., n_p:]=@Gi^T

    # 2) Tiny channel mix (K = 2*c_in_p) as a single batched matmul.
    wc_b = jnp.broadcast_to(wc_ref[...], (b_k, 2 * c_out_p, c_in2))
    q = lax.dot_general(
        wc_b, p,
        dimension_numbers=(((2,), (1,)), ((0,), (0,))),
        preferred_element_type=jnp.float32)     # (b_k, 2*c_out_p, 2*n_p)

    # 3) Complex recombination — every slice is sublane/lane tile aligned.
    sr = q[:, :c_out_p, :n_p] - q[:, c_out_p:, n_p:]     # real(salida)
    si = q[:, :c_out_p, n_p:] + q[:, c_out_p:, :n_p]     # imag(salida)

    # 4) Activation sigmoid(|z| + bias) * z / (|z| + 1e-5) on VPU/EUP.
    ab = jnp.sqrt(sr * sr + si * si)
    sig = jax.nn.sigmoid(ab + bias_ref[...])             # bias pre-broadcast (c_out_p, n_p)
    scale = sig / (ab + 1e-5)                            # exact divide (hidden under MXU)

    # Two direct lane-dense stores (real | imag halves), no concatenate temp.
    out_ref[:, :, :n_p] = scale * sr
    out_ref[:, :, n_p:] = scale * si


# ---------------------------------------------------------------------------
# Static constants (mirror the PyTorch __init__ exactly); cached per (m, N).
# ---------------------------------------------------------------------------
def _build_index_constants(m, N):
    ker_size = N // (2 * abs(m))
    L = N + ker_size + 1                       # conv1d output length
    n = np.arange(-2 * abs(m) + 1, 2 * abs(m) + 1)
    mu = np.arange(N).reshape(N, 1)
    ind = mu + ker_size * n                    # (N, 4|m|)
    cond = ((ind > 0) & (ind < N + ker_size)).astype(np.float32)
    ind_c = np.clip(ind, 0, N + ker_size)
    menos_1 = ((-1.0) ** (1 + n)).astype(np.float32)
    return ker_size, L, n, ind_c, cond, menos_1


@lru_cache(maxsize=None)
def _gcat_device(m, N, n_p):
    """Static padded (n_p, 2*n_p) f32 [G.real^T | G.imag^T] on device.

    G folds conv1d(exp filter) + the signed gather:
        salida[k, o, mu] = sum_c C[o, c] * sum_s G[mu, s] * z[k, c, s]
    """
    ker_size = N // (2 * abs(m))
    n = np.arange(-2 * abs(m) + 1, 2 * abs(m) + 1)
    menos_1 = (-1.0) ** (1 + n)
    e = np.exp(1j * 2.0 * np.pi * m * np.arange(ker_size) / N)   # exp filter taps
    G = np.zeros((N, N), np.complex128)
    for mu in range(N):
        for j, nj in enumerate(n):
            l = mu + ker_size * nj                 # z_raw index hit by this term
            if not (0 < l < N + ker_size):         # cond mask (strict, as in torch)
                continue
            base = l - ker_size                    # original z index for tap t = 0
            t0 = max(0, -base)
            t1 = min(ker_size, N - base)
            if t0 < t1:
                G[mu, base + t0:base + t1] += menos_1[j] * e[t0:t1]
    gcat = np.zeros((n_p, 2 * n_p), np.float32)
    gcat[:N, :N] = G.real.T
    gcat[:N, n_p:n_p + N] = G.imag.T
    return jnp.asarray(gcat)


# ---------------------------------------------------------------------------
# Jitted wrapper: padding, parameter plumbing, pallas_call.
# ---------------------------------------------------------------------------
@partial(jax.jit, static_argnames=("m", "N"))
def _forward(z, beta, A, bias, gcat, *, m, N):
    k, c_in, _ = z.shape
    c_out = beta.shape[0]
    n_p = gcat.shape[0]
    c_in_p = _round_up(c_in, 8)
    c_out_p = _round_up(c_out, 8)
    c_in2 = 2 * c_in_p

    # batch tile: fill the MXU M dimension (~256 rows), then pad k to a multiple
    b_k = max(1, min(k, 256 // c_in2))
    k_p = _round_up(k, b_k)

    # block-complex channel-mix weights [[Cr, -Ci], [Ci, Cr]], zero padded
    Cr = (jnp.abs(A) * jnp.cos(beta))[..., 0].astype(jnp.float32)
    Ci = (jnp.abs(A) * jnp.sin(beta))[..., 0].astype(jnp.float32)
    pad_c = ((0, c_out_p - c_out), (0, c_in_p - c_in))
    Cr = jnp.pad(Cr, pad_c)
    Ci = jnp.pad(Ci, pad_c)
    wc = jnp.concatenate(
        [jnp.concatenate([Cr, -Ci], axis=1),
         jnp.concatenate([Ci, Cr], axis=1)], axis=0)     # (2*c_out_p, 2*c_in_p)

    # real/imag stacked on the channel axis, zero padded to tile-aligned sizes
    zr = jnp.pad(jnp.real(z).astype(jnp.float32),
                 ((0, k_p - k), (0, c_in_p - c_in), (0, n_p - N)))
    zi = jnp.pad(jnp.imag(z).astype(jnp.float32),
                 ((0, k_p - k), (0, c_in_p - c_in), (0, n_p - N)))
    zs = jnp.concatenate([zr, zi], axis=1)               # (k_p, 2*c_in_p, n_p)

    # pre-broadcast bias so the in-kernel load is lane-dense
    bias_p = jnp.pad(bias.astype(jnp.float32), ((0, c_out_p - c_out), (0, 0)))
    bias_bc = jnp.broadcast_to(bias_p, (c_out_p, n_p))

    # scoped-VMEM budget from the real block footprint (grid-invariant gcat dominates)
    blk_bytes = 4 * (b_k * c_in2 * n_p + wc.size + gcat.size
                     + c_out_p * n_p + b_k * c_out_p * 2 * n_p)
    vmem_limit = int(min(96 * 2**20, max(32 * 2**20, 4 * blk_bytes)))

    kernel = partial(_harmonic_kernel, b_k=b_k, c_in2=c_in2,
                     c_out_p=c_out_p, n_p=n_p)
    out = pl.pallas_call(
        kernel,
        out_shape=jax.ShapeDtypeStruct((k_p, c_out_p, 2 * n_p), jnp.float32),
        grid=(k_p // b_k,),
        in_specs=[
            pl.BlockSpec((b_k, c_in2, n_p), lambda b: (b, 0, 0)),       # zs
            pl.BlockSpec((n_p, 2 * n_p), lambda b: (0, 0)),             # Gcat (grid-invariant)
            pl.BlockSpec((2 * c_out_p, c_in2), lambda b: (0, 0)),       # Wc   (grid-invariant)
            pl.BlockSpec((c_out_p, n_p), lambda b: (0, 0)),             # bias (grid-invariant)
        ],
        out_specs=pl.BlockSpec((b_k, c_out_p, 2 * n_p), lambda b: (b, 0, 0)),
        compiler_params=pltpu.CompilerParams(
            dimension_semantics=("parallel",),
            vmem_limit_bytes=vmem_limit),
    )(zs, gcat, wc, bias_bc)

    # un-pad and rebuild the complex output expected by the module
    # (downstream consumers could instead take the stacked real|imag layout)
    out = out[:k, :c_out]
    return out[..., :N] + 1j * out[..., n_p:n_p + N]


def capa_harmonica_1(z, beta, A, bias, *, m, N):
    assert m != 0, "m == 0 branch not implemented"   # TODO(synk): m == 0 path
    assert z.shape[-1] == N
    n_p = _round_up(N, 128)
    gcat = _gcat_device(int(m), int(N), int(n_p))    # cached static constant
    return _forward(z, beta, A, bias, gcat, m=int(m), N=int(N))


# ---------------------------------------------------------------------------
# Pure-JAX reference (independent formulation: literal conv + explicit gather).
# ---------------------------------------------------------------------------
def reference_forward(z, beta, A, bias, *, m, N):
    ker_size, L, n, ind_c, cond, menos_1 = _build_index_constants(m, N)
    phi = jnp.arange(ker_size, dtype=jnp.float32)
    W = jnp.abs(A) * jnp.exp(1j * (beta + 2.0 * np.pi * m * phi / N))
    z_pad = jnp.pad(z, ((0, 0), (0, 0), (ker_size, ker_size)))
    cols = jnp.stack([z_pad[:, :, p:p + ker_size] for p in range(L)], axis=2)
    z_raw = jnp.einsum('kclt,oct->kol', cols, W)            # (k, c_out, L)
    gathered = z_raw[:, :, ind_c]                           # (k, c_out, N, 4|m|)
    salida = (cond * menos_1 * gathered).sum(-1)
    ab = jnp.abs(salida)
    sig = jax.nn.sigmoid(ab + bias)
    return sig * salida / (ab + 1e-5)


# ---------------------------------------------------------------------------
if __name__ == "__main__":
    k_batch, c_in, c_out, N, m = 2, 4, 4, 16, 1

    key = jax.random.PRNGKey(0)
    kb, ka, kbias, kzr, kzi = jax.random.split(key, 5)
    beta = jax.random.uniform(kb, (c_out, c_in, 1), jnp.float32, -np.pi, np.pi)
    A = jax.random.uniform(ka, (c_out, c_in, 1), jnp.float32, 0.75, 1.25)
    bias = jax.random.uniform(kbias, (c_out, 1), jnp.float32, -0.1, 0.1)

    zr = jax.random.normal(kzr, (k_batch, c_in, N), jnp.float32)
    zi = jax.random.normal(kzi, (k_batch, c_in, N), jnp.float32)
    z = (zr + 1j * zi).astype(jnp.complex64)                # (k, c_in, N)

    out = jax.block_until_ready(capa_harmonica_1(z, beta, A, bias, m=m, N=N))
    ref = jax.block_until_ready(reference_forward(z, beta, A, bias, m=m, N=N))

    err = float(jnp.max(jnp.abs(out - ref)))
    if not np.isfinite(err) or err > 2e-3:
        raise AssertionError(f"mismatch vs reference, max abs err = {err}")

    print("KERNEL_OK")
</pallas_src>

<mosaic_0001>
module attributes {stable_mosaic.version = 11 : i64} {
  func.func @_harmonic_kernel(%arg0: i32, %arg1: memref<2x16x128xf32, #tpu.memory_space<vmem>>, %arg2: memref<128x256xf32, #tpu.memory_space<vmem>>, %arg3: memref<16x16xf32, #tpu.memory_space<vmem>>, %arg4: memref<8x128xf32, #tpu.memory_space<vmem>>, %arg5: memref<2x8x256xf32, #tpu.memory_space<vmem>>) attributes {dimension_semantics = [#tpu.dimension_semantics<parallel>], iteration_bounds = array<i64: 1>, scalar_prefetch = 0 : i64, scratch_operands = 0 : i64, tpu.core_type = #tpu.core_type<tc>, window_params = [{transform_indices = @transform_0, window_bounds = array<i64: 2, 16, 128>}, {pipeline_mode = #tpu.pipeline_mode<synchronous>, transform_indices = @transform_1, window_bounds = array<i64: 128, 256>}, {pipeline_mode = #tpu.pipeline_mode<synchronous>, transform_indices = @transform_2, window_bounds = array<i64: 16, 16>}, {pipeline_mode = #tpu.pipeline_mode<synchronous>, transform_indices = @transform_3, window_bounds = array<i64: 8, 128>}, {transform_indices = @transform_4, window_bounds = array<i64: 2, 8, 256>}]} {
    %c0 = arith.constant 0 : index
    %c0_0 = arith.constant 0 : index
    %c0_1 = arith.constant 0 : index
    %0 = vector.load %arg1[%c0, %c0_0, %c0_1] : memref<2x16x128xf32, #tpu.memory_space<vmem>>, vector<2x16x128xf32>
    %1 = vector.shape_cast %0 : vector<2x16x128xf32> to vector<32x128xf32>
    %c0_2 = arith.constant 0 : index
    %c0_3 = arith.constant 0 : index
    %2 = vector.load %arg2[%c0_2, %c0_3] : memref<128x256xf32, #tpu.memory_space<vmem>>, vector<128x256xf32>
    %cst = arith.constant dense<0.000000e+00> : vector<32x256xf32>
    %3 = tpu.matmul %1, %2, %cst {dimension_numbers = #tpu.dot_dimension_numbers<[1], [0], [0], [1], [0, 0, 1, 1], [], []>} : vector<32x128xf32>, vector<128x256xf32>, vector<32x256xf32> -> vector<32x256xf32>
    %4 = vector.shape_cast %3 : vector<32x256xf32> to vector<2x16x256xf32>
    %c0_4 = arith.constant 0 : index
    %c0_5 = arith.constant 0 : index
    %5 = vector.load %arg3[%c0_4, %c0_5] : memref<16x16xf32, #tpu.memory_space<vmem>>, vector<16x16xf32>
    %6 = vector.shape_cast %5 : vector<16x16xf32> to vector<1x16x16xf32>
    %7 = vector.broadcast %6 : vector<1x16x16xf32> to vector<2x16x16xf32>
    %cst_6 = arith.constant dense<0.000000e+00> : vector<2x16x256xf32>
    %8 = tpu.matmul %7, %4, %cst_6 {dimension_numbers = #tpu.dot_dimension_numbers<[2], [1], [1], [2], [0, 0, 0, 1, 1, 2], [0], [0]>} : vector<2x16x16xf32>, vector<2x16x256xf32>, vector<2x16x256xf32> -> vector<2x16x256xf32>
    %9 = vector.extract_strided_slice %8 {offsets = [0, 0, 0], sizes = [2, 8, 128], strides = [1, 1, 1]} : vector<2x16x256xf32> to vector<2x8x128xf32>
    %10 = vector.extract_strided_slice %8 {offsets = [0, 8, 128], sizes = [2, 8, 128], strides = [1, 1, 1]} : vector<2x16x256xf32> to vector<2x8x128xf32>
    %11 = arith.subf %9, %10 : vector<2x8x128xf32>
    %12 = vector.extract_strided_slice %8 {offsets = [0, 0, 128], sizes = [2, 8, 128], strides = [1, 1, 1]} : vector<2x16x256xf32> to vector<2x8x128xf32>
    %13 = vector.extract_strided_slice %8 {offsets = [0, 8, 0], sizes = [2, 8, 128], strides = [1, 1, 1]} : vector<2x16x256xf32> to vector<2x8x128xf32>
    %14 = arith.addf %12, %13 : vector<2x8x128xf32>
    %15 = arith.mulf %11, %11 : vector<2x8x128xf32>
    %16 = arith.mulf %14, %14 : vector<2x8x128xf32>
    %17 = arith.addf %15, %16 : vector<2x8x128xf32>
    %18 = math.sqrt %17 : vector<2x8x128xf32>
    %c0_7 = arith.constant 0 : index
    %c0_8 = arith.constant 0 : index
    %19 = vector.load %arg4[%c0_7, %c0_8] : memref<8x128xf32, #tpu.memory_space<vmem>>, vector<8x128xf32>
    %20 = vector.shape_cast %19 : vector<8x128xf32> to vector<1x8x128xf32>
    %21 = vector.broadcast %20 : vector<1x8x128xf32> to vector<2x8x128xf32>
    %22 = arith.addf %18, %21 : vector<2x8x128xf32>
    %23 = arith.negf %22 : vector<2x8x128xf32>
    %24 = math.exp %23 : vector<2x8x128xf32>
    %cst_9 = arith.constant 1.000000e+00 : f32
    %25 = vector.broadcast %cst_9 : f32 to vector<2x8x128xf32>
    %26 = arith.addf %25, %24 : vector<2x8x128xf32>
    %27 = arith.divf %25, %26 : vector<2x8x128xf32>
    %cst_10 = arith.constant 9.99999974E-6 : f32
    %28 = vector.broadcast %cst_10 : f32 to vector<2x8x128xf32>
    %29 = arith.addf %18, %28 : vector<2x8x128xf32>
    %30 = arith.divf %27, %29 : vector<2x8x128xf32>
    %31 = arith.mulf %30, %11 : vector<2x8x128xf32>
    %c0_11 = arith.constant 0 : index
    %c0_12 = arith.constant 0 : index
    %c0_13 = arith.constant 0 : index
    %32 = vector.load %arg5[%c0_11, %c0_12, %c0_13] : memref<2x8x256xf32, #tpu.memory_space<vmem>>, vector<2x8x128xf32>
    tpu.vector_store %arg5[%c0_11, %c0_12, %c0_13], %31 {strides = array<i32>} : memref<2x8x256xf32, #tpu.memory_space<vmem>>, vector<2x8x128xf32>,
    %33 = arith.mulf %30, %14 : vector<2x8x128xf32>
    %c0_14 = arith.constant 0 : index
    %c0_15 = arith.constant 0 : index
    %c128 = arith.constant 128 : index
    %34 = vector.load %arg5[%c0_14, %c0_15, %c128] : memref<2x8x256xf32, #tpu.memory_space<vmem>>, vector<2x8x128xf32>
    tpu.vector_store %arg5[%c0_14, %c0_15, %c128], %33 {strides = array<i32>} : memref<2x8x256xf32, #tpu.memory_space<vmem>>, vector<2x8x128xf32>,
    return
  }
  func.func @transform_0(%arg0: i32) -> (i32, i32, i32) {
    %c0_i32 = arith.constant 0 : i32
    %c0_i32_0 = arith.constant 0 : i32
    %c0_i32_1 = arith.constant 0 : i32
    return %arg0, %c0_i32, %c0_i32_0 : i32, i32, i32
  }
  func.func @transform_1(%arg0: i32) -> (i32, i32) {
    %c0_i32 = arith.constant 0 : i32
    %c0_i32_0 = arith.constant 0 : i32
    %c0_i32_1 = arith.constant 0 : i32
    return %c0_i32, %c0_i32_0 : i32, i32
  }
  func.func @transform_2(%arg0: i32) -> (i32, i32) {
    %c0_i32 = arith.constant 0 : i32
    %c0_i32_0 = arith.constant 0 : i32
    %c0_i32_1 = arith.constant 0 : i32
    return %c0_i32, %c0_i32_0 : i32, i32
  }
  func.func @transform_3(%arg0: i32) -> (i32, i32) {
    %c0_i32 = arith.constant 0 : i32
    %c0_i32_0 = arith.constant 0 : i32
    %c0_i32_1 = arith.constant 0 : i32
    return %c0_i32, %c0_i32_0 : i32, i32
  }
  func.func @transform_4(%arg0: i32) -> (i32, i32, i32) {
    %c0_i32 = arith.constant 0 : i32
    %c0_i32_0 = arith.constant 0 : i32
    %c0_i32_1 = arith.constant 0 : i32
    return %arg0, %c0_i32, %c0_i32_0 : i32, i32, i32
  }
}

</mosaic_0001>

<bundles_post_ra>
// kernel: custom-call
= control target key start
LH: loop header
LB: loop body
LE: loop exit
PB: predicated region body
PF: predicated region fallthrough
CT: control target
= control target key end

     0   :  { %2 = vsyncpa [#allocation0], 0  ;;  %s61_s0 = inlined_call_operand.hbm [shape: c64[2,4,16], index: 0, kind: input, shape index: {}]   ;;  %s62_s1 = inlined_call_operand.vmem [shape: f32[2,4,16], index: 1, kind: output, shape index: {}]  }
   0x1   :  { %s3_s8 = sshll.u32 %s62_s1, 4  ;;  %s9_s11 = scalar_lea.hbm %s61_s0, 128  ;;  %s4_s8 = int_to_ptr.vmem [resolvable:$true] %s3_s8 }
   0x2   :  { %p10_p0 = scmp.ne.s32.totalorder %s61_s0, %s9_s11  ;;  %s11_s16 = scalar_lea.hbm %s61_s0, 256 }
   0x3   :  { %p12_p1 = scmp.lt.u32.totalorder %s11_s16, %s9_s11  ;;  %p13_p2 = scmp.lt.u32.totalorder %s9_s11, %s61_s0 }
   0x5   :  { %p14_p3 = por %p13_p2, %p12_p1 }
   0x7   :  { %p15_p4 = pnand %p14_p3, %p10_p0 }
   0x9   :  { %18 = shalt.err (!%p15_p4)  }
   0xa   :  { %s19_s1 = scalar_lea.vmem %s4_s8, 128  ;;  %p24_p6 = scmp.lt.s32.totalorder %s4_s8, %s4_s8 }
   0xb   :  { %p20_p5 = scmp.ne.s32.totalorder %s4_s8, %s19_s1  ;;  %p25_p7 = scmp.lt.s32.totalorder %s19_s1, %s19_s1 }
   0xd   :  { %p26_p8 = por %p25_p7, %p24_p6 }
   0xf   :  { %p27_p9 = pnand %p26_p8, %p20_p5 }
  0x11   :  { %30 = shalt.err (!%p27_p9)  }
  0x12   :  { %6 = dma.hbm_to_vmem [thread:$0]  %s61_s0, 128, %s4_s8, [#allocation0] }
  0x13   :  { %31 = dma.done.wait [#allocation0], 128  }
  0x14   :  { %32 = vsyncadd [#allocation0], 4294967168 }
  0x15   :  { %8 = vsyncpa [#allocation0], 1 }

// kernel: custom-call.1
= control target key start
LH: loop header
LB: loop body
LE: loop exit
PB: predicated region body
PF: predicated region fallthrough
CT: control target
= control target key end

     0   :  { %s59_s0 = inlined_call_operand.hbm [shape: c64[2,4,16], index: 0, kind: input, shape index: {}]   ;;  %s60_s1 = inlined_call_operand.vmem [shape: f32[2,4,16], index: 1, kind: output, shape index: {}]  }
   0x1   :  { %s2_s8 = scalar_lea.hbm %s59_s0, 128 }
   0x2   :  { %3 = vsyncpa [#allocation0], 0  ;;  %s4_s11 = sshll.u32 %s60_s1, 4  ;;  %s34_s14 = scalar_lea.hbm %s59_s0, 256  ;;  %s5_s11 = int_to_ptr.vmem [resolvable:$true] %s4_s11 }
   0x3   :  { %p11_p0 = scmp.ne.s32.totalorder %s2_s8, %s34_s14  ;;  %p13_p1 = scmp.lt.u32.totalorder %s2_s8, %s59_s0 }
   0x4   :  { %p14_p2 = scmp.lt.u32.totalorder %s34_s14, %s34_s14  ;;  %p16_p4 = scmp.lt.u32.totalorder %s34_s14, %s2_s8 }
   0x6   :  { %p15_p3 = por %p14_p2, %p13_p1 }
   0x8   :  { %p17_p5 = por %p16_p4, %p15_p3 }
   0xa   :  { %p18_p6 = pnand %p17_p5, %p11_p0 }
   0xc   :  { %21 = shalt.err (!%p18_p6)  }
   0xd   :  { %s22_s17 = scalar_lea.vmem %s5_s11, 128  ;;  %p27_p8 = scmp.lt.s32.totalorder %s5_s11, %s5_s11 }
   0xe   :  { %p23_p7 = scmp.ne.s32.totalorder %s5_s11, %s22_s17  ;;  %p28_p9 = scmp.lt.s32.totalorder %s22_s17, %s22_s17 }
  0x10   :  { %p29_p10 = por %p28_p9, %p27_p8 }
  0x12   :  { %p30_p11 = pnand %p29_p10, %p23_p7 }
  0x14   :  { %33 = shalt.err (!%p30_p11)  }
  0x15   :  { %7 = dma.hbm_to_vmem [thread:$0]  %s2_s8, 128, %s5_s11, [#allocation0] }
  0x16   :  { %35 = dma.done.wait [#allocation0], 128  }
  0x17   :  { %36 = vsyncadd [#allocation0], 4294967168 }
  0x18   :  { %9 = vsyncpa [#allocation0], 1 }

// kernel: custom-call.2
= control target key start
LH: loop header
LB: loop body
LE: loop exit
PB: predicated region body
PF: predicated region fallthrough
CT: control target
= control target key end

     0   :  { %s126_s0 = inlined_call_operand.vmem [shape: f32[2,4,16], index: 0, kind: input, shape index: {}]   ;;  %s127_s1 = inlined_call_operand.vmem [shape: f32[2,4,16], index: 1, kind: input, shape index: {}]   ;;  %s128_s2 = inlined_call_operand.hbm [shape: c64[2,4,16], index: 2, kind: output, shape index: {}]  }
   0x1   :  { %s87_s11 = scalar_lea.hbm %s128_s2, 128 }
   0x2   :  { %4 = vsyncpa [#allocation0], 0  ;;  %s5_s14 = sshll.u32 %s126_s0, 4  ;;  %s6_s14 = int_to_ptr.vmem [resolvable:$true] %s5_s14 }
   0x3   :  { %s18_s15 = scalar_lea.vmem %s6_s14, 128  ;;  %p23_p1 = scmp.lt.s32.totalorder %s6_s14, %s6_s14 }
   0x4   :  { %p19_p0 = scmp.ne.s32.totalorder %s6_s14, %s18_s15  ;;  %p24_p2 = scmp.lt.s32.totalorder %s18_s15, %s18_s15 }
   0x6   :  { %p25_p3 = por %p24_p2, %p23_p1 }
   0x8   :  { %p26_p4 = pnand %p25_p3, %p19_p0 }
   0xa   :  { %29 = shalt.err (!%p26_p4)  }
   0xb   :  { %p31_p5 = scmp.ne.s32.totalorder %s128_s2, %s87_s11  ;;  %s32_s0 = scalar_lea.hbm %s128_s2, 256 }
   0xc   :  { %p33_p6 = scmp.lt.u32.totalorder %s32_s0, %s87_s11  ;;  %p34_p7 = scmp.lt.u32.totalorder %s87_s11, %s128_s2 }
   0xe   :  { %p35_p8 = por %p34_p7, %p33_p6 }
  0x10   :  { %p36_p9 = pnand %p35_p8, %p31_p5 }
  0x12   :  { %39 = shalt.err (!%p36_p9)  }
  0x13   :  { %8 = dma.vmem_to_hbm [thread:$0]  %s6_s14, 128, %s128_s2, [#allocation0] }
  0x14   :  { %65 = dma.done.wait [#allocation0], 128  }
  0x15   :  { %66 = vsyncadd [#allocation0], 4294967168 }
  0x16   :  { %10 = vsyncpa [#allocation0], 1 }
  0x17   :  { %11 = vsyncpa [#allocation1], 0  ;;  %s12_s28 = sshll.u32 %s127_s1, 4  ;;  %s13_s28 = int_to_ptr.vmem [resolvable:$true] %s12_s28 }
  0x18   :  { %s40_s29 = scalar_lea.vmem %s13_s28, 128  ;;  %p45_p11 = scmp.lt.s32.totalorder %s13_s28, %s13_s28 }
  0x19   :  { %p41_p10 = scmp.ne.s32.totalorder %s13_s28, %s40_s29  ;;  %p46_p12 = scmp.lt.s32.totalorder %s40_s29, %s40_s29 }
  0x1b   :  { %p47_p13 = por %p46_p12, %p45_p11 }
  0x1d   :  { %p48_p0 = pnand %p47_p13, %p41_p10 }
  0x1f   :  { %51 = shalt.err (!%p48_p0)  }
  0x20   :  { %p53_p1 = scmp.ne.s32.totalorder %s87_s11, %s32_s0  ;;  %p56_p2 = scmp.lt.u32.totalorder %s32_s0, %s32_s0 }
  0x22   :  { %p57_p3 = por %p56_p2, %p34_p7 }
  0x24   :  { %p59_p4 = por %p57_p3, %p33_p6 }
  0x26   :  { %p60_p5 = pnand %p59_p4, %p53_p1 }
  0x28   :  { %63 = shalt.err (!%p60_p5)  }
  0x29   :  { %15 = dma.vmem_to_hbm [thread:$0]  %s13_s28, 128, %s87_s11, [#allocation1] }
  0x2a   :  { %67 = dma.done.wait [#allocation1], 128  }
  0x2b   :  { %68 = vsyncadd [#allocation1], 4294967168 }
  0x2c   :  { %17 = vsyncpa [#allocation1], 1 }

// kernel: _forward.1
= control target key start
LH: loop header
LB: loop body
LE: loop exit
PB: predicated region body
PF: predicated region fallthrough
CT: control target
= control target key end

     0   :  { %9 = vsyncpa [#allocation3], 0  ;;  %s467_s15 = smov [#allocation2]   ;;  %s549_s0 = inlined_call_operand.vmem [shape: f32[2,16,128], index: 0, kind: input, shape index: {}]   ;;  %s550_s1 = inlined_call_operand.hbm [shape: f32[128,256], index: 1, kind: input, shape index: {}]   ;;  %s551_s2 = inlined_call_operand.vmem [shape: f32[16,16], index: 2, kind: input, shape index: {}]   ;;  %s552_s3 = inlined_call_operand.vmem [shape: f32[8,128], index: 3, kind: input, shape index: {}]   ;;  %s553_s4 = inlined_call_operand.vmem [shape: f32[2,8,256], index: 4, kind: output, shape index: {}]  }
   0x1   :  { %s17_s16 = sshll.u32 %s467_s15, 4  ;;  %s443_s19 = scalar_lea.hbm %s550_s1, 4096  ;;  %s18_s16 = int_to_ptr.vmem [resolvable:$true] %s17_s16 }
   0x2   :  { %p444_p0 = scmp.ne.s32.totalorder %s550_s1, %s443_s19  ;;  %p447_p1 = scmp.lt.u32.totalorder %s443_s19, %s550_s1 }
   0x4   :  { %p449_p2 = pnand %p447_p1, %p444_p0 }
   0x6   :  { %452 = shalt.err (!%p449_p2)
}
   0x7   :  { %s453_s24 = scalar_lea.vmem %s18_s16, 4096  ;;  %p458_p4 = scmp.lt.s32.totalorder %s18_s16, %s18_s16 }
   0x8   :  { %p454_p3 = scmp.ne.s32.totalorder %s18_s16, %s453_s24  ;;  %p459_p5 = scmp.lt.s32.totalorder %s453_s24, %s453_s24 }
   0xa   :  { %p460_p6 = por %p459_p5, %p458_p4 }
   0xc   :  { %p461_p7 = pnand %p460_p6, %p454_p3 }
   0xe   :  { %464 = shalt.err (!%p461_p7)
}
   0xf   :  { %s468_s25 = smov 256   ;;  %s469_s26 = smov 16  }
  0x10   :  { %23 = dma.hbm_to_vmem [thread:$0]  %s550_s1, 4096, %s18_s16, [#allocation3], %s468_s25, %s468_s25, %s469_s26  }
  0x11   :  { %465 = dma.done.wait [#allocation3], 4096  }
  0x12   :  { %466 = vsyncadd [#allocation3], 4294963200  ;;  %v470_v0 = vmov 0.0   ;;  %v36_v1 = vld [vmem:[#allocation2 + $0x8] sm:$0xff]  ;;  %v38_v2 = vld [vmem:[#allocation2 + $0x18] sm:$0xff]  ;;  %vm158_vm0 = vcmask 130048  }
  0x13   :  { %131 = vmatprep.mubr.f32.mxu0 %v470_v0  ;;  %229 = vmatprep.mubr.f32.mxu1 %v470_v0  ;;  %v35_v3 = vld [vmem:[#allocation2] sm:$0xff]  ;;  %v383_v4 = vpack.c.bf16 %v38_v2, %v36_v1  ;;  %v37_v5 = vld [vmem:[#allocation2 + $0x10] sm:$0xff]  ;;  %v40_v6 = vld [vmem:[#allocation2 + $0x28] sm:$0xff] }
  0x14   :  { %v42_v7 = vld [vmem:[#allocation2 + $0x38] sm:$0xff]  ;;  %v385_v8 = vpack.c.bf16 %v37_v5, %v35_v3  ;;  %v39_v10 = vld [vmem:[#allocation2 + $0x20] sm:$0xff]  ;;  %v41_v11 = vld [vmem:[#allocation2 + $0x30] sm:$0xff] }
  0x15   :  { %v387_v9 = vpack.c.bf16 %v42_v7, %v40_v6  ;;  %v44_v12 = vld [vmem:[#allocation2 + $0x48] sm:$0xff]  ;;  %384 = vmatprep.subr.bf16.mxu0 %v383_v4  ;;  %v46_v13 = vld [vmem:[#allocation2 + $0x58] sm:$0xff]  ;;  %v389_v14 = vpack.c.bf16 %v41_v11, %v39_v10  ;;  %v43_v16 = vld [vmem:[#allocation2 + $0x40] sm:$0xff] }
  0x16   :  { %386 = vmatpush1.bf16.msra.mxu0 %v385_v8  ;;  %v391_v15 = vpack.c.bf16 %v46_v13, %v44_v12  ;;  %v45_v17 = vld [vmem:[#allocation2 + $0x50] sm:$0xff]  ;;  %v48_v18 = vld [vmem:[#allocation2 + $0x68] sm:$0xff]  ;;  %v50_v19 = vld [vmem:[#allocation2 + $0x78] sm:$0xff] }
  0x17   :  { %388 = vmatprep.subr.bf16.mxu0 %v387_v9  ;;  %v393_v20 = vpack.c.bf16 %v45_v17, %v43_v16  ;;  %v395_v21 = vpack.c.bf16 %v50_v19, %v48_v18  ;;  %v47_v22 = vld [vmem:[#allocation2 + $0x60] sm:$0xff]  ;;  %v49_v23 = vld [vmem:[#allocation2 + $0x70] sm:$0xff]  ;;  %v52_v24 = vld [vmem:[#allocation2 + $0x88] sm:$0xff] }
  0x18   :  { %v54_v25 = vld [vmem:[#allocation2 + $0x98] sm:$0xff]  ;;  %v397_v26 = vpack.c.bf16 %v49_v23, %v47_v22  ;;  %v51_v28 = vld [vmem:[#allocation2 + $0x80] sm:$0xff]  ;;  %v53_v29 = vld [vmem:[#allocation2 + $0x90] sm:$0xff] }
  0x19   :  { %v399_v27 = vpack.c.bf16 %v54_v25, %v52_v24  ;;  %v56_v30 = vld [vmem:[#allocation2 + $0xa8] sm:$0xff]  ;;  %v58_v31 = vld [vmem:[#allocation2 + $0xb8] sm:$0xff]  ;;  %v401_v32 = vpack.c.bf16 %v53_v29, %v51_v28  ;;  %v55_v34 = vld [vmem:[#allocation2 + $0xa0] sm:$0xff] }
  0x1a   :  { %390 = vmatpush1.bf16.msra.mxu0 %v389_v14  ;;  %v403_v33 = vpack.c.bf16 %v58_v31, %v56_v30  ;;  %v57_v35 = vld [vmem:[#allocation2 + $0xb0] sm:$0xff]  ;;  %v60_v36 = vld [vmem:[#allocation2 + $0xc8] sm:$0xff]  ;;  %v62_v37 = vld [vmem:[#allocation2 + $0xd8] sm:$0xff] }
  0x1b   :  { %392 = vmatprep.subr.bf16.mxu0 %v391_v15  ;;  %v405_v38 = vpack.c.bf16 %v57_v35, %v55_v34  ;;  %v407_v39 = vpack.c.bf16 %v62_v37, %v60_v36  ;;  %v59_v40 = vld [vmem:[#allocation2 + $0xc0] sm:$0xff]  ;;  %v61_v41 = vld [vmem:[#allocation2 + $0xd0] sm:$0xff]  ;;  %v64_v42 = vld [vmem:[#allocation2 + $0xe8] sm:$0xff] }
  0x1c   :  { %v66_v43 = vld [vmem:[#allocation2 + $0xf8] sm:$0xff]  ;;  %v409_v44 = vpack.c.bf16 %v61_v41, %v59_v40  ;;  %v63_v46 = vld [vmem:[#allocation2 + $0xe0] sm:$0xff]  ;;  %v65_v47 = vld [vmem:[#allocation2 + $0xf0] sm:$0xff] }
  0x1d   :  { %v411_v45 = vpack.c.bf16 %v66_v43, %v64_v42  ;;  %v413_v48 = vpack.c.bf16 %v65_v47, %v63_v46  ;;  %v31_v49 = vld [vmem:[%s549_s0] sm:$0xff]  ;;  %v32_v50 = vld [vmem:[%s549_s0 + $0x8] sm:$0xff]  ;;  %v33_v51 = vld [vmem:[%s549_s0 + $0x10] sm:$0xff] }
  0x1e   :  { %394 = vmatpush1.bf16.msra.mxu0 %v393_v20  ;;  %v34_v52 = vld [vmem:[%s549_s0 + $0x18] sm:$0xff]  ;;  %v156_v61 = vld [vmem:[%s551_s2] sm:$0xff]  ;;  %v157_v2 = vld [vmem:[%s551_s2 + $0x8] sm:$0xff] }
  0x1f   :  { %396 = vmatprep.subr.bf16.mxu0 %v395_v21  ;;  %v343_v24 = vld [vmem:[%s552_s3] sm:$0xff] }
  0x22   :  { %398 = vmatpush1.bf16.msra.mxu0 %v397_v26 }
  0x23   :  { %400 = vmatprep.subr.bf16.mxu0 %v399_v27 }
  0x26   :  { %402 = vmatpush1.bf16.msra.mxu0 %v401_v32 }
  0x27   :  { %404 = vmatprep.subr.bf16.mxu0 %v403_v33 }
  0x2a   :  { %406 = vmatpush1.bf16.msra.mxu0 %v405_v38 }
  0x2b   :  { %408 = vmatprep.subr.bf16.mxu0 %v407_v39 }
  0x2e   :  { %410 = vmatpush1.bf16.msra.mxu0 %v409_v44 }
  0x2f   :  { %412 = vmatprep.subr.bf16.mxu0 %v411_v45 }
  0x32   :  { %414 = vmatpush1.bf16.msra.mxu0 %v413_v48 }
  0x35   :  { %132 = vmatmul.mubr.f32.vlgmr.msra.gmra.mrb[0].mxu0 %v31_v49 }
  0x36   :  { %137 = vmatprep.mubr.f32.mxu0 %v470_v0 }
  0x39   :  { %138 = vmatmul.mubr.f32.gmra.mrb[2].mxu0 %v32_v50 }
  0x3a   :  { %143 = vmatprep.mubr.f32.mxu0 %v470_v0 }
  0x3d   :  { %144 = vmatmul.mubr.f32.gmra.mrb[4].mxu0 %v33_v51 }
  0x3e   :  { %149 = vmatprep.mubr.f32.mxu0 %v470_v0 }
  0x41   :  { %150 = vmatmul.mubr.f32.gmra.mrb[6].mxu0 %v34_v52 }
 0x108   :  { %v133_v53 = vpop.f32.mrb[0].mxu0 }
 0x109   :  { %v135_v54 = vpop.f32.mrb[1].mxu0 }
 0x10c   :  { %v139_v55 = vpop.f32.mrb[2].mxu0 }
 0x10d   :  { %v417_v56 = vpack.c.bf16 %v139_v55, %v133_v53  ;;  %v141_v57 = vpop.f32.mrb[3].mxu0 }
 0x10e   :  { %v415_v58 = vpack.c.bf16 %v141_v57, %v135_v54 }
 0x110   :  { %v145_v59 = vpop.f32.mrb[4].mxu0  ;;  %416 = vmatprep.subr.bf16.mxu1 %v415_v58 }
 0x111   :  { %v147_v60 = vpop.f32.mrb[5].mxu0  ;;  %418 = vmatpush1.bf16.msra.mxu1 %v417_v56 }
 0x114   :  { %v151_v62 = vpop.f32.mrb[6].mxu0  ;;  %377 = vmatmul.mubr.msk.f32.vlgmr.msra.gmra.mrb[0].mxu1 %vm158_vm0, %v156_v61 }
 0x115   :  { %v421_v63 = vpack.c.bf16 %v151_v62, %v145_v59  ;;  %v153_v1 = vpop.f32.mrb[7].mxu0  ;;  %235 = vmatprep.mubr.f32.mxu1 %v470_v0 }
 0x116   :  { %v419_v3 = vpack.c.bf16 %v153_v1, %v147_v60 }
 0x118   :  { %378 = vmatmul.mubr.msk.f32.gmra.mrb[2].mxu1 %vm158_vm0, %v157_v2  ;;  %420 = vmatprep.subr.bf16.mxu1 %v419_v3 }
 0x119   :  { %422 = vmatpush1.bf16.msra.mxu1 %v421_v63  ;;  %306 = vmatprep.mubr.f32.mxu1 %v470_v0 }
 0x11c   :  { %379 = vmatmul.mubr.msk.f32.vlgmr.msra.gmra.mrb[4].mxu1 %vm158_vm0, %v156_v61 }
 0x11d   :  { %312 = vmatprep.mubr.f32.mxu1 %v470_v0 }
 0x120   :  { %380 = vmatmul.mubr.msk.f32.gmra.mrb[6].mxu1 %vm158_vm0, %v157_v2 }
 0x1e7   :  { %v231_v4 = vpop.f32.mrb[0].mxu1 }
 0x1e8   :  { %v233_v5 = vpop.f32.mrb[1].mxu1 }
 0x1eb   :  { %v237_v6 = vpop.f32.mrb[2].mxu1 }
 0x1ec   :  { %v321_v7 = vadd.f32 %v237_v6, %v233_v5  ;;  %v239_v8 = vpop.f32.mrb[3].mxu1 }
 0x1ed   :  { %v319_v9 = vsub.f32 %v231_v4, %v239_v8 }
 0x1ee   :  { %v325_v10 = vmul.f32 %v321_v7, %v321_v7 }
 0x1ef   :  { %v323_v11 = vmul.f32 %v319_v9, %v319_v9  ;;  %v308_v12 = vpop.f32.mrb[4].mxu1 }
 0x1f0   :  { %v310_v13 = vpop.f32.mrb[5].mxu1 }
 0x1f1   :  { %v327_v14 = vadd.f32 %v325_v10, %v323_v11 }
 0x1f3   :  { %427 = vrsqrt.f32 %v327_v14  ;;  %v314_v15 = vpop.f32.mrb[6].mxu1  ;;  %vm331_vm1 = vcmp.eq.f32.partialorder %v327_v14, inf  ;;  %v334_v23 = vand.u32 2147483648, %v327_v14  ;;  %vm333_vm2 = vcmp.eq.f32.partialorder %v327_v14, 0.0 }
 0x1f4   :  { %v322_v16 = vadd.f32 %v314_v15, %v310_v13  ;;  %v316_v17 = vpop.f32.mrb[7].mxu1 }
 0x1f5   :  { %v320_v18 = vsub.f32 %v308_v12, %v316_v17 }
 0x1f6   :  { %v326_v19 = vmul.f32 %v322_v16, %v322_v16 }
 0x1f7   :  { %v324_v20 = vmul.f32 %v320_v18, %v320_v18 }
 0x1f9   :  { %v328_v0 = vadd.f32 %v326_v19, %v324_v20 }
 0x1fb   :  { %429 = vrsqrt.f32 %v328_v0  ;;  %vm338_vm3 = vcmp.eq.f32.partialorder %v328_v0, inf  ;;  %v341_v31 = vand.u32 2147483648, %v328_v0  ;;  %vm340_vm4 = vcmp.eq.f32.partialorder %v328_v0, 0.0 }
 0x1fd   :  { %v428_v21 = vpop.eup %427 }
 0x1fe   :  { %v330_v22 = vmul.f32 %v428_v21, %v327_v14 }
 0x200   :  { %v332_v25 = vsel %vm331_vm1, %v327_v14, %v330_v22 }
 0x201   :  { %v335_v26 = vsel %vm333_vm2, %v334_v23, %v332_v25 }
 0x202   :  { %v344_v27 = vadd.f32 %v343_v24, %v335_v26  ;;  %v358_v36 = vadd.f32 1e-05, %v335_v26 }
 0x204   :  { %v381_v28 = vmul.f32 -1.442695, %v344_v27 }
 0x205   :  { %v430_v29 = vpop.eup %429 }
 0x206   :  { %431 = vpow2.f32 %v381_v28  ;;  %v337_v30 = vmul.f32 %v430_v29, %v328_v0 }
 0x208   :  { %v339_v32 = vsel %vm338_vm3, %v328_v0, %v337_v30 }
 0x209   :  { %v342_v33 = vsel %vm340_vm4, %v341_v31, %v339_v32 }
 0x20a   :  { %v345_v34 = vadd.f32 %v343_v24, %v342_v33  ;;  %v359_v39 = vadd.f32 1e-05, %v342_v33 }
 0x20c   :  { %v382_v35 = vmul.f32 -1.442695, %v345_v34 }
 0x20e   :  { %433 = vpow2.f32 %v382_v35 }
 0x20f   :  { %435 = vrcp.f32 %v358_v36 }
 0x210   :  { %v432_v37 = vpop.eup %431 }
 0x211   :  { %v352_v38 = vadd.f32 1.0, %v432_v37 }
 0x213   :  { %437 = vrcp.f32 %v352_v38 }
 0x214   :  { %439 = vrcp.f32 %v359_v39 }
 0x218   :  { %v434_v40 = vpop.eup %433 }
 0x219   :  { %v353_v41 = vadd.f32 1.0, %v434_v40  ;;  %v436_v42 = vpop.eup %435 }
 0x21b   :  { %441 = vrcp.f32 %v353_v41 }
 0x21d   :  { %v438_v43 = vpop.eup %437 }
 0x21e   :  { %v361_v44 = vmul.f32 %v438_v43, %v436_v42  ;;  %v440_v47 = vpop.eup %439 }
 0x220   :  { %v364_v45 = vmul.f32 %v361_v44, %v319_v9  ;;  %v368_v46 = vmul.f32 %v361_v44, %v321_v7 }
 0x222   :  { %366 = vst [vmem:[%s553_s4] sm:$0xff] %v364_v45  ;;  %370 = vst [vmem:[%s553_s4 + $0x8] sm:$0xff] %v368_v46 }
 0x225   :  { %v442_v48 = vpop.eup %441 }
 0x226   :  { %v363_v49 = vmul.f32 %v442_v48, %v440_v47 }
 0x228   :  { %v365_v50 = vmul.f32 %v363_v49, %v320_v18  ;;  %v369_v51 = vmul.f32 %v363_v49, %v322_v16 }
 0x22a   :  { %367 = vst [vmem:[%s553_s4 + $0x10] sm:$0xff] %v365_v50  ;;  %371 = vst [vmem:[%s553_s4 + $0x18] sm:$0xff] %v369_v51 }
 0x22b   :  { %376 = vsyncpa [#allocation3], 1 }

</bundles_post_ra>
